<compile_context>
chip_gen: v6e
topology: v6e:2x2x1
jax: 0.10.0
libtpu: 0.0.40
codegen_flags: <defaults>
</compile_context>

<pallas_src>
import functools

import numpy as np
import jax
import jax.numpy as jnp
from jax.experimental import pallas as pl
from jax.experimental.pallas import tpu as pltpu


def _triplet_kernel(emb_tile_ref, emb_all_ref, lab_col_ref, lab_row_ref,
                    sum_ref, cnt_ref, *, margin, n_valid):
    """One anchor-row tile: accumulate semihard triplet losses / counts."""
    i = pl.program_id(0)
    anc = emb_tile_ref[...]            # (TM, D), native dtype (bf16 or f32)
    allv = emb_all_ref[...]            # (B,  D), native dtype
    tm = anc.shape[0]
    b = allv.shape[0]

    # Anchor-vs-all similarities on the MXU. No input upcast; f32 accumulate.
    prec = (jax.lax.Precision.HIGHEST if anc.dtype == jnp.float32
            else jax.lax.Precision.DEFAULT)
    sim = jax.lax.dot_general(
        anc, allv, (((1,), (1,)), ((), ())),
        preferred_element_type=jnp.float32, precision=prec)        # (TM, B)
    # Embeddings are pre-normalized (||x|| == 1): ||x_a - x_j||^2 = 2 - 2<x_a, x_j>.
    dist = jnp.sqrt(jnp.maximum(2.0 - 2.0 * sim, 0.0))             # (TM, B) f32

    lab_a = lab_col_ref[...]           # (TM, 1) int32 — this tile's anchor labels
    lab_j = lab_row_ref[...]           # (1,  B) int32 — all labels
    col = jax.lax.broadcasted_iota(jnp.int32, (1, b), 1)           # column index
    row = jax.lax.broadcasted_iota(jnp.int32, (tm, 1), 0) + i * tm  # global anchor idx
    valid = col < n_valid              # mask out padded columns
    same = lab_a == lab_j                                          # (TM, B)
    pos_mask = same & (col != row) & valid     # (a, j) is a usable positive
    neg_mask = jnp.logical_not(same) & valid   # (a, j) is a usable negative

    margin_f = jnp.float32(margin)
    big = jnp.float32(1e9)
    # Non-positive columns get a huge distance so they can never form a triplet.
    dist_pos = jnp.where(pos_mask, dist, big)                      # (TM, B)

    def body(p, carry):
        acc_s, acc_c = carry
        # d(a, p) for the current positive index p, via a masked lane reduction
        # (no dynamic lane slicing / gathers).
        sel = col == p                                             # (1, B)
        d_ap = jnp.sum(jnp.where(sel, dist_pos, 0.0), axis=1, keepdims=True)
        t = dist - d_ap                           # t[a, n] = d(a, n) - d(a, p)
        # semihard miner (0 < t <= margin) AND AvgNonZero filter (margin - t > 0)
        ok = neg_mask & (t > 0.0) & (t < margin_f)
        acc_s = acc_s + jnp.where(ok, margin_f - t, 0.0)
        acc_c = acc_c + ok.astype(jnp.float32)
        return acc_s, acc_c

    zeros = jnp.zeros((tm, b), jnp.float32)
    acc_s, acc_c = jax.lax.fori_loop(0, b, body, (zeros, zeros))

    # Lane-dense per-(anchor, negative) partials; global mean happens in the wrapper.
    sum_ref[...] = acc_s
    cnt_ref[...] = acc_c


def _pick_tiles(b):
    """Anchor rows per grid step (TM) and padded batch size."""
    if b <= 128:
        return b, b            # single grid step: block shapes == full array dims
    tm = 128                   # multiple of (8, 128) -> valid sublane/lane blocking
    return tm, ((b + tm - 1) // tm) * tm


def triplet_loss_forward(embeddings, labels, margin=0.1):
    """Forward of TripletLoss (semihard miner + TripletMarginLoss + AvgNonZero)."""
    b = embeddings.shape[0]
    labels = labels.astype(jnp.int32)

    # LpDistance(normalize_embeddings=True): L2-normalize in f32, then return to the
    # native dtype so the kernel's MXU matmul sees bf16/f32 directly (no upcast).
    x32 = embeddings.astype(jnp.float32)
    norm = jnp.sqrt(jnp.sum(x32 * x32, axis=-1, keepdims=True))
    emb = (x32 / jnp.maximum(norm, 1e-12)).astype(embeddings.dtype)

    tm, b_pad = _pick_tiles(b)
    if b_pad != b:
        # NOTE: real labels are assumed >= 0; -1 marks padded rows (never a positive),
        # and padded columns are additionally masked out inside the kernel.
        emb = jnp.pad(emb, ((0, b_pad - b), (0, 0)))
        labels = jnp.pad(labels, (0, b_pad - b), constant_values=-1)
    d = emb.shape[1]

    lab_col = labels.reshape(b_pad, 1)
    lab_row = labels.reshape(1, b_pad)

    kernel = functools.partial(_triplet_kernel, margin=float(margin), n_valid=b)
    sums, cnts = pl.pallas_call(
        kernel,
        out_shape=(jax.ShapeDtypeStruct((b_pad, b_pad), jnp.float32),
                   jax.ShapeDtypeStruct((b_pad, b_pad), jnp.float32)),
        grid_spec=pl.GridSpec(
            grid=(b_pad // tm,),
            in_specs=[
                pl.BlockSpec((tm, d), lambda i: (i, 0)),       # anchor rows (tiled)
                pl.BlockSpec((b_pad, d), lambda i: (0, 0)),    # all embeddings (resident)
                pl.BlockSpec((tm, 1), lambda i: (i, 0)),       # anchor labels (column)
                pl.BlockSpec((1, b_pad), lambda i: (0, 0)),    # all labels (resident row)
            ],
            out_specs=[
                pl.BlockSpec((tm, b_pad), lambda i: (i, 0)),   # partial loss sums
                pl.BlockSpec((tm, b_pad), lambda i: (i, 0)),   # partial triplet counts
            ],
        ),
        compiler_params=pltpu.CompilerParams(
            # Independent anchor tiles -> shard the row axis across TensorCores (v7x).
            dimension_semantics=("parallel",),
            # Generous but safe scoped-VMEM cap across v5e / v6e / v7x.
            vmem_limit_bytes=32 * 1024 * 1024,
        ),
    )(emb, emb, lab_col, lab_row)

    total = jnp.sum(sums)
    count = jnp.sum(cnts)
    # AvgNonZeroReducer: mean over positive-loss triplets; 0.0 if there are none.
    return jnp.where(count > 0, total / jnp.maximum(count, 1.0), jnp.float32(0.0))


def _reference_loss(embeddings, labels, margin):
    """Pure-numpy (float64) reference mirroring pytorch_metric_learning exactly."""
    emb = np.asarray(embeddings, dtype=np.float64)
    lab = np.asarray(labels)
    emb = emb / np.maximum(np.linalg.norm(emb, axis=1, keepdims=True), 1e-12)
    b = emb.shape[0]
    dist = np.linalg.norm(emb[:, None, :] - emb[None, :, :], axis=-1)
    total, count = 0.0, 0
    for a in range(b):
        for p in range(b):
            if p == a or lab[p] != lab[a]:
                continue
            for n in range(b):
                if lab[n] == lab[a]:
                    continue
                t = dist[a, n] - dist[a, p]
                if not (0.0 < t <= margin):     # semihard miner
                    continue
                l = max(margin - t, 0.0)        # TripletMarginLoss
                if l > 0.0:                     # AvgNonZeroReducer keeps loss > 0
                    total += l
                    count += 1
    return total / count if count else 0.0


if __name__ == "__main__":
    key = jax.random.PRNGKey(0)
    B, D, n_classes = 16, 32, 4     # tiny demo shapes; Pallas fixed overhead dominates
    margin = 0.1                    # module default

    embeddings = jax.random.normal(key, (B, D), dtype=jnp.float32)
    labels = jnp.array([c for c in range(n_classes) for _ in range(B // n_classes)],
                       dtype=jnp.int32)

    loss = jax.block_until_ready(triplet_loss_forward(embeddings, labels, margin))
    ref = _reference_loss(np.asarray(embeddings), np.asarray(labels), margin)

    assert np.isfinite(float(loss)), float(loss)
    # f32 kernel vs f64 reference; tolerance also covers a single boundary-triplet flip.
    assert np.allclose(float(loss), ref, rtol=2e-2, atol=3e-3), (float(loss), ref)
    print("KERNEL_OK")
</pallas_src>

<mosaic_0001>
module attributes {stable_mosaic.version = 11 : i64} {
  func.func @_triplet_kernel(%arg0: i32, %arg1: memref<16x32xf32, #tpu.memory_space<vmem>>, %arg2: memref<16x32xf32, #tpu.memory_space<vmem>>, %arg3: memref<16x1xi32, #tpu.memory_space<vmem>>, %arg4: memref<1x16xi32, #tpu.memory_space<vmem>>, %arg5: memref<16x16xf32, #tpu.memory_space<vmem>>, %arg6: memref<16x16xf32, #tpu.memory_space<vmem>>) attributes {dimension_semantics = [#tpu.dimension_semantics<parallel>], iteration_bounds = array<i64: 1>, scalar_prefetch = 0 : i64, scratch_operands = 0 : i64, tpu.core_type = #tpu.core_type<tc>, window_params = [{transform_indices = @transform_0, window_bounds = array<i64: 16, 32>}, {pipeline_mode = #tpu.pipeline_mode<synchronous>, transform_indices = @transform_1, window_bounds = array<i64: 16, 32>}, {transform_indices = @transform_2, window_bounds = array<i64: 16, 1>}, {pipeline_mode = #tpu.pipeline_mode<synchronous>, transform_indices = @transform_3, window_bounds = array<i64: 1, 16>}, {transform_indices = @transform_4, window_bounds = array<i64: 16, 16>}, {transform_indices = @transform_5, window_bounds = array<i64: 16, 16>}]} {
    %c0 = arith.constant 0 : index
    %c0_0 = arith.constant 0 : index
    %0 = vector.load %arg1[%c0, %c0_0] : memref<16x32xf32, #tpu.memory_space<vmem>>, vector<16x32xf32>
    %c0_1 = arith.constant 0 : index
    %c0_2 = arith.constant 0 : index
    %1 = vector.load %arg2[%c0_1, %c0_2] : memref<16x32xf32, #tpu.memory_space<vmem>>, vector<16x32xf32>
    %cst = arith.constant dense<0.000000e+00> : vector<16x16xf32>
    %2 = tpu.matmul %0, %1, %cst {dimension_numbers = #tpu.dot_dimension_numbers<[1], [1], [0], [0], [0, 0, 1, 0], [], []>, precision = #tpu.contract_precision<fp32>} : vector<16x32xf32>, vector<16x32xf32>, vector<16x16xf32> -> vector<16x16xf32>
    %cst_3 = arith.constant 2.000000e+00 : f32
    %3 = vector.broadcast %cst_3 : f32 to vector<16x16xf32>
    %4 = arith.mulf %3, %2 : vector<16x16xf32>
    %cst_4 = arith.constant 2.000000e+00 : f32
    %5 = vector.broadcast %cst_4 : f32 to vector<16x16xf32>
    %6 = arith.subf %5, %4 : vector<16x16xf32>
    %cst_5 = arith.constant 0.000000e+00 : f32
    %7 = vector.broadcast %cst_5 : f32 to vector<16x16xf32>
    %8 = arith.maximumf %6, %7 : vector<16x16xf32>
    %9 = math.sqrt %8 : vector<16x16xf32>
    %c0_6 = arith.constant 0 : index
    %c0_7 = arith.constant 0 : index
    %10 = vector.load %arg3[%c0_6, %c0_7] : memref<16x1xi32, #tpu.memory_space<vmem>>, vector<16x1xi32>
    %c0_8 = arith.constant 0 : index
    %c0_9 = arith.constant 0 : index
    %11 = vector.load %arg4[%c0_8, %c0_9] : memref<1x16xi32, #tpu.memory_space<vmem>>, vector<1x16xi32>
    %12 = tpu.iota {dimensions = array<i32: 1>} : vector<1x16xi32>
    %13 = tpu.iota {dimensions = array<i32: 0>} : vector<16x1xi32>
    %c16_i32 = arith.constant 16 : i32
    %14 = arith.muli %arg0, %c16_i32 : i32
    %15 = vector.broadcast %14 : i32 to vector<16x1xi32>
    %16 = arith.addi %13, %15 : vector<16x1xi32>
    %c16_i32_10 = arith.constant 16 : i32
    %17 = vector.broadcast %c16_i32_10 : i32 to vector<1x16xi32>
    %18 = arith.cmpi slt, %12, %17 : vector<1x16xi32>
    %19 = vector.broadcast %10 : vector<16x1xi32> to vector<16x16xi32>
    %20 = vector.broadcast %11 : vector<1x16xi32> to vector<16x16xi32>
    %21 = arith.cmpi eq, %19, %20 : vector<16x16xi32>
    %22 = vector.broadcast %12 : vector<1x16xi32> to vector<16x16xi32>
    %23 = vector.broadcast %16 : vector<16x1xi32> to vector<16x16xi32>
    %24 = arith.cmpi ne, %22, %23 : vector<16x16xi32>
    %25 = arith.andi %21, %24 : vector<16x16xi1>
    %26 = vector.broadcast %18 : vector<1x16xi1> to vector<16x16xi1>
    %27 = arith.andi %25, %26 : vector<16x16xi1>
    %cst_11 = arith.constant dense<true> : vector<16x16xi1>
    %28 = arith.xori %21, %cst_11 : vector<16x16xi1>
    %29 = vector.broadcast %18 : vector<1x16xi1> to vector<16x16xi1>
    %30 = arith.andi %28, %29 : vector<16x16xi1>
    %cst_12 = arith.constant 1.000000e+09 : f32
    %31 = vector.broadcast %cst_12 : f32 to vector<16x16xf32>
    %32 = arith.select %27, %9, %31 : vector<16x16xi1>, vector<16x16xf32>
    %cst_13 = arith.constant 0.000000e+00 : f32
    %33 = vector.broadcast %cst_13 : f32 to vector<16x16xf32>
    %cst_14 = arith.constant 1.000000e-01 : f32
    %c0_i32 = arith.constant 0 : i32
    %c16_i32_15 = arith.constant 16 : i32
    %34 = arith.addi %c0_i32, %c16_i32_15 : i32
    %c1_i32 = arith.constant 1 : i32
    %35:2 = scf.for %arg7 = %c0_i32 to %34 step %c1_i32 iter_args(%arg8 = %33, %arg9 = %33) -> (vector<16x16xf32>, vector<16x16xf32>)  : i32 {
      %38 = vector.broadcast %arg7 : i32 to vector<1x16xi32>
      %39 = arith.cmpi eq, %12, %38 : vector<1x16xi32>
      %cst_21 = arith.constant 0.000000e+00 : f32
      %40 = vector.shape_cast %39 : vector<1x16xi1> to vector<1x16xi1>
      %41 = vector.broadcast %40 : vector<1x16xi1> to vector<16x16xi1>
      %42 = vector.broadcast %cst_21 : f32 to vector<16x16xf32>
      %43 = arith.select %41, %32, %42 : vector<16x16xi1>, vector<16x16xf32>
      %cst_22 = arith.constant dense<0.000000e+00> : vector<16xf32>
      %44 = vector.multi_reduction <add>, %43, %cst_22 [1] : vector<16x16xf32> to vector<16xf32>
      %45 = vector.shape_cast %44 : vector<16xf32> to vector<16x1xf32>
      %46 = vector.broadcast %45 : vector<16x1xf32> to vector<16x16xf32>
      %47 = arith.subf %9, %46 : vector<16x16xf32>
      %cst_23 = arith.constant 0.000000e+00 : f32
      %48 = vector.broadcast %cst_23 : f32 to vector<16x16xf32>
      %49 = arith.cmpf ogt, %47, %48 : vector<16x16xf32>
      %50 = arith.andi %30, %49 : vector<16x16xi1>
      %51 = vector.broadcast %cst_14 : f32 to vector<16x16xf32>
      %52 = arith.cmpf olt, %47, %51 : vector<16x16xf32>
      %53 = arith.andi %50, %52 : vector<16x16xi1>
      %54 = vector.broadcast %cst_14 : f32 to vector<16x16xf32>
      %55 = arith.subf %54, %47 : vector<16x16xf32>
      %cst_24 = arith.constant 0.000000e+00 : f32
      %56 = vector.broadcast %cst_24 : f32 to vector<16x16xf32>
      %57 = arith.select %53, %55, %56 : vector<16x16xi1>, vector<16x16xf32>
      %58 = arith.addf %arg8, %57 : vector<16x16xf32>
      %59 = arith.extui %53 : vector<16x16xi1> to vector<16x16xi32>
      %60 = arith.sitofp %59 : vector<16x16xi32> to vector<16x16xf32>
      %61 = arith.addf %arg9, %60 : vector<16x16xf32>
      scf.yield %58, %61 : vector<16x16xf32>, vector<16x16xf32>
    }
    %c16_i32_16 = arith.constant 16 : i32
    %c0_17 = arith.constant 0 : index
    %c0_18 = arith.constant 0 : index
    %36 = vector.load %arg5[%c0_17, %c0_18] : memref<16x16xf32, #tpu.memory_space<vmem>>, vector<16x16xf32>
    tpu.vector_store %arg5[%c0_17, %c0_18], %35#0 {strides = array<i32>} : memref<16x16xf32, #tpu.memory_space<vmem>>, vector<16x16xf32>,
    %c0_19 = arith.constant 0 : index
    %c0_20 = arith.constant 0 : index
    %37 = vector.load %arg6[%c0_19, %c0_20] : memref<16x16xf32, #tpu.memory_space<vmem>>, vector<16x16xf32>
    tpu.vector_store %arg6[%c0_19, %c0_20], %35#1 {strides = array<i32>} : memref<16x16xf32, #tpu.memory_space<vmem>>, vector<16x16xf32>,
    return
  }
  func.func @transform_0(%arg0: i32) -> (i32, i32) {
    %c0_i32 = arith.constant 0 : i32
    %c0_i32_0 = arith.constant 0 : i32
    return %arg0, %c0_i32 : i32, i32
  }
  func.func @transform_1(%arg0: i32) -> (i32, i32) {
    %c0_i32 = arith.constant 0 : i32
    %c0_i32_0 = arith.constant 0 : i32
    %c0_i32_1 = arith.constant 0 : i32
    return %c0_i32, %c0_i32_0 : i32, i32
  }
  func.func @transform_2(%arg0: i32) -> (i32, i32) {
    %c0_i32 = arith.constant 0 : i32
    %c0_i32_0 = arith.constant 0 : i32
    return %arg0, %c0_i32 : i32, i32
  }
  func.func @transform_3(%arg0: i32) -> (i32, i32) {
    %c0_i32 = arith.constant 0 : i32
    %c0_i32_0 = arith.constant 0 : i32
    %c0_i32_1 = arith.constant 0 : i32
    return %c0_i32, %c0_i32_0 : i32, i32
  }
  func.func @transform_4(%arg0: i32) -> (i32, i32) {
    %c0_i32 = arith.constant 0 : i32
    %c0_i32_0 = arith.constant 0 : i32
    return %arg0, %c0_i32 : i32, i32
  }
  func.func @transform_5(%arg0: i32) -> (i32, i32) {
    %c0_i32 = arith.constant 0 : i32
    %c0_i32_0 = arith.constant 0 : i32
    return %arg0, %c0_i32 : i32, i32
  }
}

</mosaic_0001>

<bundles_post_ra>
// kernel: tpu_custom_call.1
= control target key start
LH: loop header
LB: loop body
LE: loop exit
PB: predicated region body
PF: predicated region fallthrough
CT: control target
= control target key end

     0   :  { %11 = vsyncpa [#allocation3], 0  ;;  %s1069_s0 = inlined_call_operand.vmem [shape: f32[16,32], index: 0, kind: input, shape index: {}]   ;;  %s1070_s1 = inlined_call_operand.hbm [shape: f32[16,32], index: 1, kind: input, shape index: {}]   ;;  %s1071_s2 = inlined_call_operand.vmem [shape: s32[16,1], index: 2, kind: input, shape index: {}]   ;;  %s1072_s3 = inlined_call_operand.vmem [shape: s32[1,16], index: 3, kind: input, shape index: {}]   ;;  %s1073_s4 = inlined_call_operand.hbm [shape: f32[16,16], index: 4, kind: output, shape index: {0}]   ;;  %s1074_s5 = inlined_call_operand.hbm [shape: f32[16,16], index: 5, kind: output, shape index: {1}]  }
   0x1   :  { %12 = vsyncpa [#allocation4], 0 }
   0x2   :  { %13 = vsyncpa [#allocation7], 0  ;;  %s941_s18 = smov [#allocation2]  }
   0x3   :  { %s21_s19 = sshll.u32 %s941_s18, 4  ;;  %s22_s19 = int_to_ptr.vmem [resolvable:$true] %s21_s19 }
   0x4   :  { %s843_s20 = scalar_lea.vmem %s22_s19, 256  ;;  %p848_p1 = scmp.lt.s32.totalorder %s22_s19, %s22_s19 }
   0x5   :  { %p844_p0 = scmp.ne.s32.totalorder %s22_s19, %s843_s20  ;;  %p849_p2 = scmp.lt.s32.totalorder %s843_s20, %s843_s20 }
   0x7   :  { %p850_p3 = por %p849_p2, %p848_p1 }
   0x9   :  { %p851_p4 = pnand %p850_p3, %p844_p0 }
   0xb   :  { %854 = shalt.err (!%p851_p4)
}
   0xc   :  { %s942_s21 = smov 128   ;;  %s943_s22 = smov 8  }
   0xd   :  { %27 = dma.hbm_to_vmem [thread:$0]  %s1070_s1, 256, %s22_s19, [#allocation3], %s942_s21, %s942_s21, %s943_s22  }
   0xe   :  { %915 = dma.done.wait [#allocation3], 256  }
   0xf   :  { %916 = vsyncadd [#allocation3], 4294967040  ;;  %v944_v0 = vmov 0   ;;  %vm39_vm0 = vcmask 261120   ;;  %v38_v1 = vld [vmem:[#allocation2 + $0x8] sm:$0xff]  ;;  %v37_v2 = vld [vmem:[#allocation2] sm:$0xff]  ;;  %v577_v31 = vlaneseq }
  0x10   :  { %830 = vset.pattern.permute.xlu0 %v944_v0  ;;  %v35_v3 = vld [vmem:[%s1069_s0] sm:$0xff]  ;;  %v50_v4 = vsel %vm39_vm0, %v38_v1, 0  ;;  %v47_v5 = vsel %vm39_vm0, %v37_v2, 0  ;;  %v36_v7 = vld [vmem:[%s1069_s0 + $0x8] sm:$0xff]  ;;  %vm945_vm3 = vmmov 1  }
  0x11   :  { %v41_v6 = vsel %vm39_vm0, %v35_v3, 0  ;;  %v574_v8 = vld [vmem:[%s1071_s2] sm:$0xff]  ;;  %v81_v9 = vand.u32 4294901760, %v50_v4  ;;  %v84_v10 = vand.u32 4294901760, %v47_v5  ;;  %v44_v12 = vsel %vm39_vm0, %v36_v7, 0  ;;  %v575_v14 = vld [vmem:[%s1071_s2 + $0x8] sm:$0xff] }
  0x12   :  { %v119_v11 = vand.u32 4294901760, %v41_v6  ;;  %588 = vperm.xlu0 %830, %v574_v8   ;;  %v129_v13 = vand.u32 4294901760, %v44_v12  ;;  %v713_v32 = vld [vmem:[%s1072_s3] ss:$0 sm:$0xff]  ;;  %v1000_v33 = vand.u32 127, %v577_v31  ;;  %v580_v2 = vshrl.u32 %v577_v31, 7 }
  0x13   :  { %740 = vmatprep.subr.mxu0 %v81_v9  ;;  %v169_v15 = vsub.f32 %v50_v4, %v81_v9  ;;  %v176_v17 = vsub.f32 %v47_v5, %v84_v10  ;;  %s1037_s3 = smov 0  }
  0x14   :  { %v120_v16 = vsub.f32 %v41_v6, %v119_v11  ;;  %751 = vmatprep.mubr.f32.mxu1 %v119_v11  ;;  %741 = vmatpush3.xpose.msra.mxu0 %v81_v9  ;;  %v130_v18 = vsub.f32 %v44_v12, %v129_v13  ;;  %vm586_vm2 = vcmp.lt.s32.totalorder %v1000_v33, 16  ;;  %v581_v3 = vadd.s32 8, %v580_v2 }
  0x15   :  { %742 = vmatprep.subr.mxu0 %v84_v10  ;;  %v170_v19 = vand.u32 4294901760, %v169_v15  ;;  %v177_v21 = vand.u32 4294901760, %v176_v17  ;;  %vm599_vm10 = vcmp.ne.s32.totalorder %v1000_v33, %v580_v2 }
  0x16   :  { %v121_v20 = vand.u32 4294901760, %v120_v16  ;;  %591 = vperm.xlu0 %830, %v575_v14   ;;  %v131_v22 = vand.u32 4294901760, %v130_v18  ;;  %vm600_vm9 = vcmp.ne.s32.totalorder %v1000_v33, %v581_v3 }
  0x17   :  { %v171_v23 = vsub.f32 %v169_v15, %v170_v19  ;;  %v178_v25 = vsub.f32 %v176_v17, %v177_v21 }
  0x18   :  { %v122_v24 = vsub.f32 %v120_v16, %v121_v20  ;;  %743 = vmatpush3.xpose.msra.mxu0 %v84_v10  ;;  %v132_v26 = vsub.f32 %v130_v18, %v131_v22 }
  0x19   :  { %v172_v27 = vand.u32 4294901760, %v171_v23  ;;  %754 = vmatprep.subr.mxu0 %v169_v15  ;;  %v179_v29 = vand.u32 4294901760, %v178_v25 }
  0x1a   :  { %v123_v28 = vand.u32 4294901760, %v122_v24  ;;  %v133_v30 = vand.u32 4294901760, %v132_v26 }
  0x1b   :  { %747 = vmatprep.subr.mxu1 %v172_v27 }
  0x1c   :  { %744 = vmatprep.mubr.f32.mxu0 %v123_v28  ;;  %748 = vmatpush3.xpose.msra.mxu1 %v172_v27 }
  0x1d   :  { %745 = vmatmul.mubr.f32.vlgmr.msra.gmra.mxu0 %v133_v30  ;;  %749 = vmatprep.subr.mxu1 %v179_v29 }
  0x1e   :  { %755 = vmatpush3.xpose.msra.mxu0 %v169_v15  ;;  %758 = vmatprep.mubr.f32.mxu0 %v120_v16 }
  0x1f   :  { %756 = vmatprep.subr.mxu0 %v176_v17 }
  0x20   :  { %750 = vmatpush3.xpose.msra.mxu1 %v179_v29 }
  0x21   :  { %761 = vmatprep.subr.mxu1 %v81_v9 }
  0x22   :  { %757 = vmatpush3.xpose.msra.mxu0 %v176_v17 }
  0x23   :  { %768 = vmatprep.subr.mxu0 %v170_v19  ;;  %752 = vmatmul.mubr.f32.vlgmr.msra.gmra.mxu1 %v129_v13 }
  0x24   :  { %762 = vmatpush3.xpose.msra.mxu1 %v81_v9  ;;  %765 = vmatprep.mubr.f32.mxu1 %v121_v20  ;;  %v929_v20 = vmov 0.0  }
  0x25   :  { %759 = vmatmul.mubr.f32.vlgmr.msra.gmra.mxu0 %v130_v18  ;;  %763 = vmatprep.subr.mxu1 %v84_v10  ;;  %v921_v18 = vmov 0.0  }
  0x26   :  { %769 = vmatpush3.xpose.msra.mxu0 %v170_v19  ;;  %772 = vmatprep.mubr.f32.mxu0 %v119_v11  ;;  %v925_v19 = vmov 0.0  }
  0x27   :  { %770 = vmatprep.subr.mxu0 %v177_v21 }
  0x28   :  { %764 = vmatpush3.xpose.msra.mxu1 %v84_v10 }
  0x29   :  { %775 = vmatprep.subr.mxu1 %v81_v9 }
  0x2a   :  { %771 = vmatpush3.xpose.msra.mxu0 %v177_v21  ;;  %v933_v21 = vmov 0.0  }
  0x2b   :  { %766 = vmatmul.mubr.f32.vlgmr.msra.gmra.mxu1 %v131_v22 }
  0x2c   :  { %776 = vmatpush3.xpose.msra.mxu1 %v81_v9  ;;  %779 = vmatprep.mubr.f32.mxu1 %v119_v11 }
  0x2d   :  { %773 = vmatmul.mubr.f32.vlgmr.msra.gmra.mxu0 %v129_v13  ;;  %777 = vmatprep.subr.mxu1 %v84_v10 }
  0x30   :  { %778 = vmatpush3.xpose.msra.mxu1 %v84_v10 }
  0x33   :  { %780 = vmatmul.mubr.f32.vlgmr.msra.gmra.mxu1 %v129_v13 }
  0x8d   :  { %v589_v34 = vpop.permute.xlu0 %588 }
  0x8e   :  { %vm597_vm1 = vcmp.eq.s32.totalorder %v589_v34, %v713_v32 }
  0x8f   :  { %vm607_vm4 = vmxor %vm597_vm1, %vm945_vm3 }
  0x90   :  { %vm1006_vm5 = vmand %vm607_vm4, %vm586_vm2 }
  0x91   :  { %v592_v35 = vpop.permute.xlu0 %591  ;;  %vm601_vm13 = vmand %vm597_vm1, %vm599_vm10 }
  0x92   :  { %vm598_vm6 = vcmp.eq.s32.totalorder %v592_v35, %v713_v32  ;;  %vm1031_vm1 = vmand %vm601_vm13, %vm586_vm2 }
  0x93   :  { %vm608_vm7 = vmxor %vm598_vm6, %vm945_vm3 }
  0x94   :  { %vm1013_vm8 = vmand %vm608_vm7, %vm586_vm2 }
  0x95   :  { %vm602_vm11 = vmand %vm598_vm6, %vm600_vm9 }
  0x96   :  { %vm1023_vm0 = vmand %vm602_vm11, %vm586_vm2 }
  0xdd   :  { %v746_v38 = vpop.f32.mrf.mxu0 }
  0xdf   :  { %v125_v39 = vpop.f32.mrf.mxu0 }
  0xe3   :  { %v753_v40 = vpop.f32.mrf.mxu1 }
  0xe4   :  { %v223_v43 = vadd.f32 %v753_v40, %v746_v38 }
  0xe5   :  { %v216_v41 = vpop.f32.mrf.mxu1  ;;  %v760_v42 = vpop.f32.mrf.mxu0 }
  0xe6   :  { %v217_v44 = vadd.f32 %v216_v41, %v125_v39  ;;  %v306_v47 = vadd.f32 %v760_v42, %v223_v43 }
  0xe7   :  { %v298_v45 = vpop.f32.mrf.mxu0 }
  0xe8   :  { %v299_v50 = vadd.f32 %v298_v45, %v217_v44 }
  0xeb   :  { %v767_v46 = vpop.f32.mrf.mxu1 }
  0xec   :  { %v389_v51 = vadd.f32 %v767_v46, %v306_v47 }
  0xed   :  { %v380_v48 = vpop.f32.mrf.mxu1  ;;  %v774_v49 = vpop.f32.mrf.mxu0 }
  0xee   :  { %v381_v52 = vadd.f32 %v380_v48, %v299_v50  ;;  %v472_v54 = vadd.f32 %v774_v49, %v389_v51 }
  0xef   :  { %v465_v53 = vpop.f32.mrf.mxu0 }
  0xf0   :  { %v466_v56 = vadd.f32 %v465_v53, %v381_v52 }
  0xf3   :  { %v781_v55 = vpop.f32.mrf.mxu1 }
  0xf4   :  { %v551_v57 = vadd.f32 %v781_v55, %v472_v54 }
  0xf5   :  { %v544_v58 = vpop.f32.mrf.mxu1 }
  0xf6   :  { %v555_v59 = vmul.f32 2.0, %v551_v57  ;;  %v545_v60 = vadd.f32 %v544_v58, %v466_v56 }
  0xf8   :  { %v557_v61 = vsub.f32 2.0, %v555_v59  ;;  %v554_v62 = vmul.f32 2.0, %v545_v60 }
  0xfa   :  { %v559_v63 = vmax.f32 %v557_v61, 0.0  ;;  %v556_v0 = vsub.f32 2.0, %v554_v62 }
  0xfc   :  { %831 = vrsqrt.f32 %v559_v63  ;;  %v558_v1 = vmax.f32 %v556_v0, 0.0  ;;  %vm569_vm12 = vcmp.eq.f32.partialorder %v559_v63, inf  ;;  %v572_v7 = vand.u32 2147483648, %v559_v63 }
  0xfd   :  { %vm571_vm14 = vcmp.eq.f32.partialorder %v559_v63, 0.0 }
  0xfe   :  { %833 = vrsqrt.f32 %v558_v1  ;;  %vm562_vm15 = vcmp.eq.f32.partialorder %v558_v1, inf  ;;  %v565_v10 = vand.u32 2147483648, %v558_v1  ;;  %vm564_vm3 = vcmp.eq.f32.partialorder %v558_v1, 0.0 }
 0x109   :  { %v832_v4 = vpop.eup %831 }
 0x10a   :  { %v568_v5 = vmul.f32 %v832_v4, %v559_v63 }
 0x10b   :  { %v834_v6 = vpop.eup %833 }
 0x10c   :  { %v561_v8 = vmul.f32 %v834_v6, %v558_v1  ;;  %v570_v9 = vsel %vm569_vm12, %v559_v63, %v568_v5 }
 0x10d   :  { %v573_v11 = vsel %vm571_vm14, %v572_v7, %v570_v9 }
 0x10e   :  { %v563_v13 = vsel %vm562_vm15, %v558_v1, %v561_v8  ;;  %v612_v14 = vsel %vm1023_vm0, %v573_v11, 1e+09 }
 0x10f   :  { %v566_v15 = vsel %vm564_vm3, %v565_v10, %v563_v13 }
 0x110   :  { %v611_v17 = vsel %vm1031_vm1, %v566_v15, 1e+09 }
 0x111 LB: > { %v623_v22 = vstv %s939_s3  ;;  %vm629_vm2 = vcmask 130048   ;;  %v946_v34 = vmov 0.0   ;;  %s618_s3 = sadd.s32 1, %s939_s3   ;;  %s939_s3 = sphi %s1037_s3, %s618_s3   ;;  %v935_v21 = vphi %v933_v21, %v934_v21   ;;  %v931_v20 = vphi %v929_v20, %v930_v20   ;;  %v927_v19 = vphi %v925_v19, %v926_v19   ;;  %v923_v18 = vphi %v921_v18, %v922_v18  }
 0x112   : > { %vm624_vm4 = vcmp.eq.s32.totalorder %v1000_v33, %v623_v22  ;;  %p615_p5 = scmp.ge.s32.totalorder %s618_s3, 16  }
 0x113   : > { %v627_v23 = vsel %vm624_vm4, %v611_v17, 0.0  ;;  %v628_v24 = vsel %vm624_vm4, %v612_v14, 0.0  ;;  %s947_s7 = smov (%p615_p5), [#allocation5]   ;;  %s948_s9 = smov (%p615_p5), [#allocation6]  }
 0x114   : > { %v630_v25 = vsel %vm629_vm2, %v627_v23, 0.0  ;;  %v633_v26 = vsel %vm629_vm2, %v628_v24, 0.0  ;;  %s668_s8 = sshll.u32 (%p615_p5), %s947_s7, 4  ;;  %s680_s10 = sshll.u32 (%p615_p5), %s948_s9, 4  ;;  %s669_s8 = int_to_ptr.vmem [resolvable:$true] %s668_s8  ;;  %s681_s10 = int_to_ptr.vmem [resolvable:$true] %s680_s10 }
 0x115   : > { %631 = vadd.xlane.f32.xlu0 %v630_v25  ;;  %s855_s11 = scalar_lea.vmem (%p615_p5), %s669_s8, 256  ;;  %p860_p7 = scmp.lt.s32.totalorder (%p615_p5), %s669_s8, %s669_s8 }
 0x116   :  { %p856_p6 = scmp.ne.s32.totalorder (%p615_p5), %s669_s8, %s855_s11  ;;  %p861_p8 = scmp.lt.s32.totalorder (%p615_p5), %s855_s11, %s855_s11 }
 0x118   :  { %p862_p9 = por (%p615_p5), %p861_p8, %p860_p7 }
 0x119   : > { %634 = vadd.xlane.f32.xlu0 %v633_v26 }
 0x11a   :  { %p863_p10 = pnand (%p615_p5), %p862_p9, %p856_p6 }
 0x19e   : > { %v632_v27 = vpop.xlane.xlu0 %631 }
 0x19f   : > { %v636_v28 = vsub.f32 %v566_v15, %v632_v27 }
 0x1a1   : > { %vm638_vm6 = vcmp.gt.f32.partialorder %v636_v28, 0.0  ;;  %vm642_vm7 = vcmp.lt.f32.partialorder %v636_v28, 0.1  ;;  %v646_v29 = vsub.f32 0.1, %v636_v28 }
 0x1a2   : > { %vm640_vm9 = vmand %vm1006_vm5, %vm638_vm6  ;;  %v635_v30 = vpop.xlane.xlu0 %634 }
 0x1a3   : > { %vm644_vm10 = vmand %vm640_vm9, %vm642_vm7  ;;  %v637_v31 = vsub.f32 %v573_v11, %v635_v30 }
 0x1a4   : > { %v648_v32 = vsel %vm644_vm10, %v646_v29, 0.0  ;;  %v714_v35 = vsel %vm644_vm10, 1.0, %v946_v34 }
 0x1a5   : > { %v650_v38 = vadd.f32 %v935_v21, %v648_v32   ;;  %v656_v39 = vadd.f32 %v927_v19, %v714_v35   ;;  %vm639_vm11 = vcmp.gt.f32.partialorder %v637_v31, 0.0  ;;  %vm643_vm12 = vcmp.lt.f32.partialorder %v637_v31, 0.1 }
 0x1a6   : > { %vm641_vm13 = vmand %vm1013_vm8, %vm639_vm11  ;;  %v647_v40 = vsub.f32 0.1, %v637_v31 }
 0x1a7   : > { %vm645_vm14 = vmand %vm641_vm13, %vm643_vm12  ;;  %v926_v19 = vmov %v656_v39   ;;  %v934_v21 = vmov %v650_v38   ;;  %617 = sbr.rel (!%p615_p5) target bundleno = 273 (0x111), region = 55  ;;  %659 = vst.msk [vmem:[#allocation5] sm:$0xff] (%p615_p5), %vm629_vm2, %v650_v38 }
 0x1a8   : > { %v649_v41 = vsel %vm645_vm14, %v647_v40, 0.0  ;;  %v715_v42 = vsel %vm645_vm14, 1.0, %v946_v34  ;;  %661 = vst.msk [vmem:[#allocation6] sm:$0xff] (%p615_p5), %vm629_vm2, %v656_v39 }
 0x1a9   : > { %v651_v43 = vadd.f32 %v931_v20, %v649_v41   ;;  %v657_v44 = vadd.f32 %v923_v18, %v715_v42  }
 0x1ab   : > { %v922_v18 = vmov %v657_v44   ;;  %v930_v20 = vmov %v651_v43   ;;  %660 = vst.msk [vmem:[#allocation5 + $0x8] sm:$0xff] (%p615_p5), %vm629_vm2, %v651_v43  ;;  %662 = vst.msk [vmem:[#allocation6 + $0x8] sm:$0xff] (%p615_p5), %vm629_vm2, %v657_v44 }
 0x1ac   :  { %866 = shalt.err (!%p863_p10)
}
 0x1ad   :  { %674 = dma.vmem_to_hbm [thread:$0]  %s669_s8, 256, %s1073_s4, [#allocation4], %s942_s21, %s942_s21, %s943_s22  }
 0x1ae   :  { %s875_s14 = scalar_lea.vmem %s681_s10, 256  ;;  %p880_p12 = scmp.lt.s32.totalorder %s681_s10, %s681_s10 }
 0x1af   :  { %p876_p11 = scmp.ne.s32.totalorder %s681_s10, %s875_s14  ;;  %p881_p13 = scmp.lt.s32.totalorder %s875_s14, %s875_s14 }
 0x1b1   :  { %p882_p0 = por %p881_p13, %p880_p12 }
 0x1b3   :  { %p883_p1 = pnand %p882_p0, %p876_p11 }
 0x1b5   :  { %886 = shalt.err (!%p883_p1)
}
 0x1b6   :  { %686 = dma.vmem_to_hbm [thread:$0]  %s681_s10, 256, %s1074_s5, [#allocation7], %s942_s21, %s942_s21, %s943_s22  }
 0x1b7   :  { %917 = dma.done.wait [#allocation4], 256  }
 0x1b8   :  { %918 = vsyncadd [#allocation4], 4294967040 }
 0x1b9   :  { %919 = dma.done.wait [#allocation7], 256  }
 0x1ba   :  { %920 = vsyncadd [#allocation7], 4294967040 }
 0x1bb   :  { %693 = vsyncpa [#allocation3], 1 }
 0x1bc   :  { %694 = vsyncpa [#allocation4], 1 }
 0x1bd   :  { %695 = vsyncpa [#allocation7], 1 }

</bundles_post_ra>
